<compile_context>
chip_gen: v6e
topology: v6e:2x2x1
jax: 0.10.0
libtpu: 0.0.40
codegen_flags: <defaults>
</compile_context>

<pallas_src>
import functools

import jax
import jax.numpy as jnp
from jax import lax
from jax.experimental import pallas as pl
from jax.experimental.pallas import tpu as pltpu


def _round_up(x, m):
    return (x + m - 1) // m * m


# ---------------------------------------------------------------------------
# Fused kernel: tiled GEMM (conv as im2col matmul) with an f32 accumulator
# over the K grid axis; bias + LeakyReLU applied on the last K step.
# ---------------------------------------------------------------------------
def conv_gemm_bias_act_kernel(x_ref, w_ref, b_ref, o_ref, acc_ref, *, act, slope):
    k = pl.program_id(2)

    @pl.when(k == 0)
    def _():
        acc_ref[...] = jnp.zeros_like(acc_ref)

    acc_ref[...] += jnp.dot(x_ref[...], w_ref[...],
                            preferred_element_type=jnp.float32)

    @pl.when(k == pl.num_programs(2) - 1)
    def _():
        out = acc_ref[...] + b_ref[...]             # (tm, tn) + (1, tn)
        if act:                                     # static: dropped when act=False
            out = jnp.where(out >= 0.0, out, slope * out)
        o_ref[...] = out.astype(o_ref.dtype)


# ---------------------------------------------------------------------------
# Wrapper: im2col glue (bf16) + one pallas_call.  NCHW in / NCHW out.
# ---------------------------------------------------------------------------
def conv2d_leaky(x, w, b, *, stride=1, same_padding=False, act=True,
                 slope=0.1, tm=512, tn=256, tk=512):
    N, C, H, W = x.shape
    OC, _, KH, KW = w.shape
    pad = (KH - 1) // 2 if same_padding else 0
    OH = (H + 2 * pad - KH) // stride + 1
    OW = (W + 2 * pad - KW) // stride + 1

    xp = jnp.pad(x, ((0, 0), (0, 0), (pad, pad), (pad, pad)))

    # im2col: patch feature axis ordered (C, KH*KW) to match the weight layout.
    cols = []
    for kh in range(KH):
        for kw in range(KW):
            cols.append(xp[:, :, kh:kh + stride * OH:stride,
                              kw:kw + stride * OW:stride])     # (N, C, OH, OW)
    xcol = jnp.stack(cols, axis=0)                             # (KH*KW, N, C, OH, OW)
    xcol = jnp.transpose(xcol, (1, 3, 4, 2, 0))                # (N, OH, OW, C, KH*KW)
    xcol = xcol.reshape(N * OH * OW, C * KH * KW).astype(jnp.bfloat16)
    wcol = jnp.transpose(w, (1, 2, 3, 0)).reshape(C * KH * KW, OC)
    wcol = wcol.astype(jnp.bfloat16)

    M, K = xcol.shape

    # Tile sizes: MXU-friendly and (8,128)-aligned, clamped so small problems
    # use a single tile per axis.  Padded extents are exact multiples.
    tm = min(tm, _round_up(M, 256))
    tn = min(tn, _round_up(OC, 128))
    tk = min(tk, _round_up(K, 128))
    Mp = _round_up(M, tm)
    OCp = _round_up(OC, tn)
    Kp = _round_up(K, tk)

    xcol_p = jnp.zeros((Mp, Kp), jnp.bfloat16).at[:M, :K].set(xcol)
    wcol_p = jnp.zeros((Kp, OCp), jnp.bfloat16).at[:K, :OC].set(wcol)
    bias_p = jnp.zeros((1, OCp), jnp.float32).at[0, :OC].set(b.astype(jnp.float32))

    grid = (Mp // tm, OCp // tn, Kp // tk)

    # VMEM budget: double-buffered bf16 input tiles + f32 accumulator + f32 out.
    vmem_need = (2 * tm * tk * 2 + 2 * tk * tn * 2
                 + tm * tn * 4 + 2 * tm * tn * 4 + 2 * tn * 4)
    vmem_limit = int(min(max(2 * vmem_need, 32 * 1024 * 1024), 60 * 1024 * 1024))

    kernel = functools.partial(conv_gemm_bias_act_kernel,
                               act=bool(act), slope=float(slope))

    out_p = pl.pallas_call(
        kernel,
        out_shape=jax.ShapeDtypeStruct((Mp, OCp), jnp.float32),
        grid_spec=pltpu.PrefetchScalarGridSpec(
            num_scalar_prefetch=0,
            grid=grid,
            in_specs=[pl.BlockSpec((tm, tk), lambda i, j, k: (i, k)),
                      pl.BlockSpec((tk, tn), lambda i, j, k: (k, j)),
                      pl.BlockSpec((1, tn), lambda i, j, k: (0, j))],
            out_specs=pl.BlockSpec((tm, tn), lambda i, j, k: (i, j)),
            scratch_shapes=[pltpu.VMEM((tm, tn), jnp.float32)]),
        compiler_params=pltpu.CompilerParams(
            dimension_semantics=("parallel", "parallel", "arbitrary"),
            vmem_limit_bytes=vmem_limit),
    )(xcol_p, wcol_p, bias_p)

    out = out_p[:M, :OC].reshape(N, OH, OW, OC)
    return jnp.transpose(out, (0, 3, 1, 2))                    # back to NCHW


# ---------------------------------------------------------------------------
# Pure-JAX reference (matches PyTorch Conv2d(bias=True) + LeakyReLU(0.1))
# ---------------------------------------------------------------------------
def reference(x, w, b, *, stride, pad, act, slope=0.1):
    y = lax.conv_general_dilated(
        x, w, (stride, stride), [(pad, pad), (pad, pad)],
        dimension_numbers=('NCHW', 'OIHW', 'NCHW'))
    y = y + b.reshape(1, -1, 1, 1)
    if act:
        y = jnp.where(y >= 0, y, slope * y)
    return y


if __name__ == "__main__":
    # Module config: Conv2d(in_channels=4, out_channels=8, kernel_size=3,
    #                       stride=1, act=True, same_padding=True)
    N, C, H, W = 2, 4, 16, 16
    OC, KH, KW = 8, 3, 3
    stride, same_padding, act = 1, True, True
    pad = (KH - 1) // 2 if same_padding else 0

    key = jax.random.PRNGKey(0)
    kx, kw, kb = jax.random.split(key, 3)
    x = jax.random.normal(kx, (N, C, H, W), dtype=jnp.float32)
    w = 0.1 * jax.random.normal(kw, (OC, C, KH, KW), dtype=jnp.float32)
    b = 0.1 * jax.random.normal(kb, (OC,), dtype=jnp.float32)

    out = conv2d_leaky(x, w, b, stride=stride,
                       same_padding=same_padding, act=act)
    out = jax.block_until_ready(out)

    ref = reference(x, w, b, stride=stride, pad=pad, act=act)
    assert out.shape == ref.shape, (out.shape, ref.shape)
    max_err = float(jnp.max(jnp.abs(out - ref)))
    # bf16 MXU inputs with f32 accumulation: expected abs error ~1e-2 at these scales.
    assert jnp.allclose(out, ref, rtol=5e-2, atol=5e-2), max_err

    print("KERNEL_OK")
</pallas_src>

<mosaic_0001>
module attributes {stable_mosaic.version = 11 : i64} {
  func.func @conv_gemm_bias_act_kernel(%arg0: i32, %arg1: i32, %arg2: i32, %arg3: memref<512x128xbf16, #tpu.memory_space<vmem>>, %arg4: memref<128x128xbf16, #tpu.memory_space<vmem>>, %arg5: memref<1x128xf32, #tpu.memory_space<vmem>>, %arg6: memref<512x128xf32, #tpu.memory_space<vmem>>, %arg7: memref<512x128xf32, #tpu.memory_space<vmem>>) attributes {dimension_semantics = [#tpu.dimension_semantics<parallel>, #tpu.dimension_semantics<parallel>, #tpu.dimension_semantics<arbitrary>], iteration_bounds = array<i64: 1, 1, 1>, scalar_prefetch = 0 : i64, scratch_operands = 1 : i64, tpu.core_type = #tpu.core_type<tc>, window_params = [{transform_indices = @transform_0, window_bounds = array<i64: 512, 128>}, {transform_indices = @transform_1, window_bounds = array<i64: 128, 128>}, {transform_indices = @transform_2, window_bounds = array<i64: 1, 128>}, {transform_indices = @transform_3, window_bounds = array<i64: 512, 128>}]} {
    %c0_i32 = arith.constant 0 : i32
    %0 = arith.cmpi eq, %arg2, %c0_i32 : i32
    %1 = arith.extui %0 : i1 to i32
    %c0_i32_0 = arith.constant 0 : i32
    %2 = arith.cmpi ne, %1, %c0_i32_0 : i32
    scf.if %2 {
      %cst_10 = arith.constant 0.000000e+00 : f32
      %12 = vector.broadcast %cst_10 : f32 to vector<512x128xf32>
      %c0_11 = arith.constant 0 : index
      %c0_12 = arith.constant 0 : index
      %13 = vector.load %arg7[%c0_11, %c0_12] : memref<512x128xf32, #tpu.memory_space<vmem>>, vector<512x128xf32>
      tpu.vector_store %arg7[%c0_11, %c0_12], %12 {strides = array<i32>} : memref<512x128xf32, #tpu.memory_space<vmem>>, vector<512x128xf32>,
    } else {
    }
    %c0 = arith.constant 0 : index
    %c0_1 = arith.constant 0 : index
    %3 = vector.load %arg7[%c0, %c0_1] : memref<512x128xf32, #tpu.memory_space<vmem>>, vector<512x128xf32>
    %c0_2 = arith.constant 0 : index
    %c0_3 = arith.constant 0 : index
    %4 = vector.load %arg3[%c0_2, %c0_3] : memref<512x128xbf16, #tpu.memory_space<vmem>>, vector<512x128xbf16>
    %c0_4 = arith.constant 0 : index
    %c0_5 = arith.constant 0 : index
    %5 = vector.load %arg4[%c0_4, %c0_5] : memref<128x128xbf16, #tpu.memory_space<vmem>>, vector<128x128xbf16>
    %cst = arith.constant dense<0.000000e+00> : vector<512x128xf32>
    %6 = tpu.matmul %4, %5, %cst {dimension_numbers = #tpu.dot_dimension_numbers<[1], [0], [0], [1], [0, 0, 1, 1], [], []>} : vector<512x128xbf16>, vector<128x128xbf16>, vector<512x128xf32> -> vector<512x128xf32>
    %7 = arith.addf %3, %6 : vector<512x128xf32>
    %c0_6 = arith.constant 0 : index
    %c0_7 = arith.constant 0 : index
    %8 = vector.load %arg7[%c0_6, %c0_7] : memref<512x128xf32, #tpu.memory_space<vmem>>, vector<512x128xf32>
    tpu.vector_store %arg7[%c0_6, %c0_7], %7 {strides = array<i32>} : memref<512x128xf32, #tpu.memory_space<vmem>>, vector<512x128xf32>,
    %c0_i32_8 = arith.constant 0 : i32
    %9 = arith.cmpi eq, %arg2, %c0_i32_8 : i32
    %10 = arith.extui %9 : i1 to i32
    %c0_i32_9 = arith.constant 0 : i32
    %11 = arith.cmpi ne, %10, %c0_i32_9 : i32
    scf.if %11 {
      %c0_10 = arith.constant 0 : index
      %c0_11 = arith.constant 0 : index
      %12 = vector.load %arg7[%c0_10, %c0_11] : memref<512x128xf32, #tpu.memory_space<vmem>>, vector<512x128xf32>
      %c0_12 = arith.constant 0 : index
      %c0_13 = arith.constant 0 : index
      %13 = vector.load %arg5[%c0_12, %c0_13] : memref<1x128xf32, #tpu.memory_space<vmem>>, vector<1x128xf32>
      %14 = vector.broadcast %13 : vector<1x128xf32> to vector<512x128xf32>
      %15 = arith.addf %12, %14 : vector<512x128xf32>
      %cst_14 = arith.constant 0.000000e+00 : f32
      %16 = vector.broadcast %cst_14 : f32 to vector<512x128xf32>
      %17 = arith.cmpf oge, %15, %16 : vector<512x128xf32>
      %cst_15 = arith.constant 1.000000e-01 : f32
      %18 = vector.broadcast %cst_15 : f32 to vector<512x128xf32>
      %19 = arith.mulf %18, %15 : vector<512x128xf32>
      %20 = arith.select %17, %15, %19 : vector<512x128xi1>, vector<512x128xf32>
      %c0_16 = arith.constant 0 : index
      %c0_17 = arith.constant 0 : index
      %21 = vector.load %arg6[%c0_16, %c0_17] : memref<512x128xf32, #tpu.memory_space<vmem>>, vector<512x128xf32>
      tpu.vector_store %arg6[%c0_16, %c0_17], %20 {strides = array<i32>} : memref<512x128xf32, #tpu.memory_space<vmem>>, vector<512x128xf32>,
    } else {
    }
    return
  }
  func.func @transform_0(%arg0: i32, %arg1: i32, %arg2: i32) -> (i32, i32) {
    %c0_i32 = arith.constant 0 : i32
    return %arg0, %arg2 : i32, i32
  }
  func.func @transform_1(%arg0: i32, %arg1: i32, %arg2: i32) -> (i32, i32) {
    %c0_i32 = arith.constant 0 : i32
    return %arg2, %arg1 : i32, i32
  }
  func.func @transform_2(%arg0: i32, %arg1: i32, %arg2: i32) -> (i32, i32) {
    %c0_i32 = arith.constant 0 : i32
    %c0_i32_0 = arith.constant 0 : i32
    return %c0_i32, %arg1 : i32, i32
  }
  func.func @transform_3(%arg0: i32, %arg1: i32, %arg2: i32) -> (i32, i32) {
    %c0_i32 = arith.constant 0 : i32
    return %arg0, %arg1 : i32, i32
  }
}

</mosaic_0001>

<bundles_post_ra>
// kernel: tpu_custom_call.1
= control target key start
LH: loop header
LB: loop body
LE: loop exit
PB: predicated region body
PF: predicated region fallthrough
CT: control target
= control target key end

     0   :  { %8 = vsyncpa [#allocation4], 0  ;;  %s1720_s0 = inlined_call_operand.hbm [shape: bf16[512,128], index: 0, kind: input, shape index: {}]   ;;  %s1721_s1 = inlined_call_operand.hbm [shape: bf16[128,128], index: 1, kind: input, shape index: {}]   ;;  %s1722_s2 = inlined_call_operand.vmem [shape: f32[1,128], index: 2, kind: input, shape index: {}]   ;;  %s1723_s3 = inlined_call_operand.hbm [shape: f32[512,128], index: 3, kind: output, shape index: {}]  }
   0x1   :  { %9 = vsyncpa [#allocation7], 0 }
   0x2   :  { %10 = vsyncpa [#allocation5], 0  ;;  %s1615_s12 = smov [#allocation3]  }
   0x3   :  { %s16_s13 = sshll.u32 %s1615_s12, 4  ;;  %s17_s13 = int_to_ptr.vmem [resolvable:$true] %s16_s13 }
   0x4   :  { %s1557_s14 = scalar_lea.vmem %s17_s13, 4096  ;;  %p1562_p1 = scmp.lt.s32.totalorder %s17_s13, %s17_s13 }
   0x5   :  { %p1558_p0 = scmp.ne.s32.totalorder %s17_s13, %s1557_s14  ;;  %p1563_p2 = scmp.lt.s32.totalorder %s1557_s14, %s1557_s14 }
   0x7   :  { %p1564_p3 = por %p1563_p2, %p1562_p1 }
   0x9   :  { %p1565_p4 = pnand %p1564_p3, %p1558_p0 }
   0xb   :  { %1568 = shalt.err (!%p1565_p4)
}
   0xc   :  { %s1616_s15 = smov 64   ;;  %s1617_s16 = smov 4  }
   0xd   :  { %22 = dma.hbm_to_vmem [thread:$0]  %s1720_s0, 4096, %s17_s13, [#allocation4], %s1616_s15, %s1616_s15, %s1617_s16  }
   0xe   :  { %s1618_s19 = smov [#allocation6]  }
   0xf   :  { %s28_s20 = sshll.u32 %s1618_s19, 4  ;;  %s29_s20 = int_to_ptr.vmem [resolvable:$true] %s28_s20 }
  0x10   :  { %s1577_s21 = scalar_lea.vmem %s29_s20, 1024  ;;  %p1582_p6 = scmp.lt.s32.totalorder %s29_s20, %s29_s20 }
  0x11   :  { %p1578_p5 = scmp.ne.s32.totalorder %s29_s20, %s1577_s21  ;;  %p1583_p7 = scmp.lt.s32.totalorder %s1577_s21, %s1577_s21 }
  0x13   :  { %p1584_p8 = por %p1583_p7, %p1582_p6 }
  0x15   :  { %p1585_p9 = pnand %p1584_p8, %p1578_p5 }
  0x17   :  { %1588 = shalt.err (!%p1585_p9)
}
  0x18   :  { %34 = dma.hbm_to_vmem [thread:$0]  %s1721_s1, 1024, %s29_s20, [#allocation7], %s1616_s15, %s1616_s15, %s1617_s16  }
  0x19   :  { %1609 = dma.done.wait [#allocation4], 4096  }
  0x1a   :  { %1610 = vsyncadd [#allocation4], 4294963200 }
  0x1b   :  { %1611 = dma.done.wait [#allocation7], 1024  }
  0x1c   :  { %1612 = vsyncadd [#allocation7], 4294966272  ;;  %v1509_v0 = vld [vmem:[#allocation6 + $0x38] sm:$0xff]   ;;  %v1510_v1 = vld [vmem:[#allocation6 + $0x30] sm:$0xff]  }
  0x1d   :  { %1406 = vmatprep.subr.bf16.mxu0 %v1509_v0  ;;  %1486 = vmatprep.subr.bf16.mxu1 %v1509_v0  ;;  %v1511_v2 = vld [vmem:[#allocation6 + $0x28] sm:$0xff]   ;;  %v1512_v3 = vld [vmem:[#allocation6 + $0x20] sm:$0xff]   ;;  %v1513_v6 = vld [vmem:[#allocation6 + $0x18] sm:$0xff]  }
  0x1e   :  { %1407 = vmatpush3.bf16.msra.mxu0 %v1509_v0  ;;  %1494 = vmatpush3.bf16.msra.mxu1 %v1509_v0  ;;  %v1517_v4 = vld [vmem:[#allocation3] sm:$0xff]   ;;  %v1514_v7 = vld [vmem:[#allocation6 + $0x10] sm:$0xff]   ;;  %v1515_v8 = vld [vmem:[#allocation6 + $0x8] sm:$0xff]  }
  0x1f   :  { %1408 = vmatprep.subr.bf16.mxu0 %v1510_v1  ;;  %1487 = vmatprep.subr.bf16.mxu1 %v1510_v1  ;;  %v1518_v5 = vld [vmem:[#allocation3 + $0x80] sm:$0xff]   ;;  %v1519_v10 = vld [vmem:[#allocation3 + $0x8] sm:$0xff]   ;;  %v1521_v12 = vld [vmem:[#allocation3 + $0x10] sm:$0xff]  }
  0x20   :  { %1422 = vmatprep.mubr.bf16.mxu0 %v1517_v4  ;;  %1454 = vmatprep.mubr.bf16.mxu1 %v1518_v5  ;;  %v1516_v9 = vld [vmem:[#allocation6] sm:$0xff]   ;;  %v1520_v11 = vld [vmem:[#allocation3 + $0x88] sm:$0xff]   ;;  %v1522_v13 = vld [vmem:[#allocation3 + $0x90] sm:$0xff]  }
  0x21   :  { %v1523_v14 = vld [vmem:[#allocation3 + $0x18] sm:$0xff]   ;;  %v1525_v16 = vld [vmem:[#allocation3 + $0x20] sm:$0xff]   ;;  %v1527_v18 = vld [vmem:[#allocation3 + $0x28] sm:$0xff]  }
  0x22   :  { %1409 = vmatpush3.bf16.msra.mxu0 %v1510_v1  ;;  %1495 = vmatpush3.bf16.msra.mxu1 %v1510_v1  ;;  %v1524_v15 = vld [vmem:[#allocation3 + $0x98] sm:$0xff]   ;;  %v1526_v17 = vld [vmem:[#allocation3 + $0xa0] sm:$0xff]   ;;  %v1528_v19 = vld [vmem:[#allocation3 + $0xa8] sm:$0xff]  }
  0x23   :  { %1410 = vmatprep.subr.bf16.mxu0 %v1511_v2  ;;  %1488 = vmatprep.subr.bf16.mxu1 %v1511_v2  ;;  %v1529_v20 = vld [vmem:[#allocation3 + $0x30] sm:$0xff]   ;;  %v1531_v22 = vld [vmem:[#allocation3 + $0x38] sm:$0xff]   ;;  %v1533_v24 = vld [vmem:[#allocation3 + $0x40] sm:$0xff]  }
  0x24   :  { %v1530_v21 = vld [vmem:[#allocation3 + $0xb0] sm:$0xff]   ;;  %v1532_v23 = vld [vmem:[#allocation3 + $0xb8] sm:$0xff]   ;;  %v1534_v25 = vld [vmem:[#allocation3 + $0xc0] sm:$0xff]  }
  0x25   :  { %v1535_v26 = vld [vmem:[#allocation3 + $0x48] sm:$0xff]   ;;  %v1537_v28 = vld [vmem:[#allocation3 + $0x50] sm:$0xff]   ;;  %v1539_v30 = vld [vmem:[#allocation3 + $0x58] sm:$0xff]  }
  0x26   :  { %1411 = vmatpush3.bf16.msra.mxu0 %v1511_v2  ;;  %1496 = vmatpush3.bf16.msra.mxu1 %v1511_v2  ;;  %v1536_v27 = vld [vmem:[#allocation3 + $0xc8] sm:$0xff]   ;;  %v1538_v29 = vld [vmem:[#allocation3 + $0xd0] sm:$0xff]   ;;  %v1540_v31 = vld [vmem:[#allocation3 + $0xd8] sm:$0xff]  }
  0x27   :  { %1412 = vmatprep.subr.bf16.mxu0 %v1512_v3  ;;  %1489 = vmatprep.subr.bf16.mxu1 %v1512_v3  ;;  %v1541_v32 = vld [vmem:[#allocation3 + $0x60] sm:$0xff]   ;;  %v1543_v34 = vld [vmem:[#allocation3 + $0x68] sm:$0xff]   ;;  %v1545_v36 = vld [vmem:[#allocation3 + $0x70] sm:$0xff]  }
  0x28   :  { %v1542_v33 = vld [vmem:[#allocation3 + $0xe0] sm:$0xff]   ;;  %v1544_v35 = vld [vmem:[#allocation3 + $0xe8] sm:$0xff]   ;;  %v1546_v37 = vld [vmem:[#allocation3 + $0xf0] sm:$0xff]  }
  0x29   :  { %v1547_v38 = vld [vmem:[#allocation3 + $0x78] sm:$0xff]   ;;  %v1651_v40 = vld [vmem:[%s1722_s2] ss:$0 sm:$0xff]  ;;  %s1619_s2 = smov [#allocation8]  }
  0x2a   :  { %1413 = vmatpush3.bf16.msra.mxu0 %v1512_v3  ;;  %1497 = vmatpush3.bf16.msra.mxu1 %v1512_v3  ;;  %v1548_v39 = vld [vmem:[#allocation3 + $0xf8] sm:$0xff]   ;;  %s1312_s24 = sshll.u32 %s1619_s2, 4  ;;  %s1313_s24 = int_to_ptr.vmem [resolvable:$true] %s1312_s24 }
  0x2b   :  { %1414 = vmatprep.subr.bf16.mxu0 %v1513_v6  ;;  %1490 = vmatprep.subr.bf16.mxu1 %v1513_v6  ;;  %s1589_s25 = scalar_lea.vmem %s1313_s24, 8192  ;;  %p1594_p11 = scmp.lt.s32.totalorder %s1313_s24, %s1313_s24 }
  0x2c   :  { %p1590_p10 = scmp.ne.s32.totalorder %s1313_s24, %s1589_s25  ;;  %p1595_p12 = scmp.lt.s32.totalorder %s1589_s25, %s1589_s25 }
  0x2e   :  { %1415 = vmatpush3.bf16.msra.mxu0 %v1513_v6  ;;  %1498 = vmatpush3.bf16.msra.mxu1 %v1513_v6  ;;  %p1596_p13 = por %p1595_p12, %p1594_p11 }
  0x2f   :  { %1416 = vmatprep.subr.bf16.mxu0 %v1514_v7  ;;  %1491 = vmatprep.subr.bf16.mxu1 %v1514_v7 }
  0x30   :  { %p1597_p0 = pnand %p1596_p13, %p1590_p10 }
  0x32   :  { %1417 = vmatpush3.bf16.msra.mxu0 %v1514_v7  ;;  %1499 = vmatpush3.bf16.msra.mxu1 %v1514_v7 }
  0x33   :  { %1418 = vmatprep.subr.bf16.mxu0 %v1515_v8  ;;  %1492 = vmatprep.subr.bf16.mxu1 %v1515_v8 }
  0x36   :  { %1419 = vmatpush3.bf16.msra.mxu0 %v1515_v8  ;;  %1500 = vmatpush3.bf16.msra.mxu1 %v1515_v8 }
  0x37   :  { %1420 = vmatprep.subr.bf16.mxu0 %v1516_v9  ;;  %1493 = vmatprep.subr.bf16.mxu1 %v1516_v9 }
  0x3a   :  { %1421 = vmatpush3.bf16.msra.mxu0 %v1516_v9  ;;  %1501 = vmatpush3.bf16.msra.mxu1 %v1516_v9 }
  0x3d   :  { %1423 = vmatmul.mubr.bf16.vlgmr.msra.gmra.mxu0 %v1519_v10  ;;  %1455 = vmatmul.mubr.bf16.vlgmr.msra.gmra.mxu1 %v1520_v11 }
  0x3e   :  { %1426 = vmatprep.mubr.bf16.mxu0 %v1521_v12  ;;  %1458 = vmatprep.mubr.bf16.mxu1 %v1522_v13 }
  0x45   :  { %1427 = vmatmul.mubr.bf16.gmra.mxu0 %v1523_v14  ;;  %1459 = vmatmul.mubr.bf16.gmra.mxu1 %v1524_v15 }
  0x46   :  { %1430 = vmatprep.mubr.bf16.mxu0 %v1525_v16  ;;  %1462 = vmatprep.mubr.bf16.mxu1 %v1526_v17 }
  0x4d   :  { %1431 = vmatmul.mubr.bf16.gmra.mxu0 %v1527_v18  ;;  %1463 = vmatmul.mubr.bf16.gmra.mxu1 %v1528_v19 }
  0x4e   :  { %1434 = vmatprep.mubr.bf16.mxu0 %v1529_v20  ;;  %1466 = vmatprep.mubr.bf16.mxu1 %v1530_v21 }
  0x55   :  { %1435 = vmatmul.mubr.bf16.gmra.mxu0 %v1531_v22  ;;  %1467 = vmatmul.mubr.bf16.gmra.mxu1 %v1532_v23 }
  0x56   :  { %1438 = vmatprep.mubr.bf16.mxu0 %v1533_v24  ;;  %1470 = vmatprep.mubr.bf16.mxu1 %v1534_v25 }
  0x5d   :  { %1439 = vmatmul.mubr.bf16.gmra.mxu0 %v1535_v26  ;;  %1471 = vmatmul.mubr.bf16.gmra.mxu1 %v1536_v27 }
  0x5e   :  { %1442 = vmatprep.mubr.bf16.mxu0 %v1537_v28  ;;  %1474 = vmatprep.mubr.bf16.mxu1 %v1538_v29 }
  0x65   :  { %1443 = vmatmul.mubr.bf16.gmra.mxu0 %v1539_v30  ;;  %1475 = vmatmul.mubr.bf16.gmra.mxu1 %v1540_v31 }
  0x66   :  { %1446 = vmatprep.mubr.bf16.mxu0 %v1541_v32  ;;  %1478 = vmatprep.mubr.bf16.mxu1 %v1542_v33 }
  0x6d   :  { %1447 = vmatmul.mubr.bf16.gmra.mxu0 %v1543_v34  ;;  %1479 = vmatmul.mubr.bf16.gmra.mxu1 %v1544_v35 }
  0x6e   :  { %1450 = vmatprep.mubr.bf16.mxu0 %v1545_v36  ;;  %1482 = vmatprep.mubr.bf16.mxu1 %v1546_v37 }
  0x75   :  { %1451 = vmatmul.mubr.bf16.gmra.mxu0 %v1547_v38  ;;  %1483 = vmatmul.mubr.bf16.gmra.mxu1 %v1548_v39 }
  0xfd   :  { %v1424_v41 = vpop.f32.mrf.mxu0  ;;  %v1456_v42 = vpop.f32.mrf.mxu1 }
  0xfe   :  { %v989_v43 = vadd.f32 %v1424_v41, %v1651_v40  ;;  %v1021_v44 = vadd.f32 %v1456_v42, %v1651_v40 }
  0xff   :  { %v530_v45 = vpop.f32.mrf.mxu0  ;;  %v658_v46 = vpop.f32.mrf.mxu1 }
 0x100   :  { %vm1053_vm0 = vcmp.ge.f32.partialorder %v989_v43, 0.0  ;;  %v1117_v47 = vmul.f32 0.1, %v989_v43  ;;  %vm1085_vm1 = vcmp.ge.f32.partialorder %v1021_v44, 0.0  ;;  %v1149_v48 = vmul.f32 0.1, %v1021_v44 }
 0x101   :  { %v987_v49 = vadd.f32 %v1651_v40, %v530_v45  ;;  %v1019_v50 = vadd.f32 %v1651_v40, %v658_v46  ;;  %v1425_v51 = vpop.f32.mrf.mxu0  ;;  %v1457_v52 = vpop.f32.mrf.mxu1 }
 0x102   :  { %v1181_v53 = vsel %vm1053_vm0, %v989_v43, %v1117_v47  ;;  %v1213_v54 = vsel %vm1085_vm1, %v1021_v44, %v1149_v48  ;;  %v990_v55 = vadd.f32 %v1425_v51, %v1651_v40  ;;  %v1022_v56 = vadd.f32 %v1457_v52, %v1651_v40 }
 0x103   :  { %1245 = vst [vmem:[#allocation8 + $0x10] sm:$0xff] %v1181_v53  ;;  %1277 = vst [vmem:[#allocation8 + $0x110] sm:$0xff] %v1213_v54  ;;  %vm1051_vm2 = vcmp.ge.f32.partialorder %v987_v49, 0.0  ;;  %v1115_v57 = vmul.f32 0.1, %v987_v49  ;;  %vm1083_vm3 = vcmp.ge.f32.partialorder %v1019_v50, 0.0  ;;  %v533_v59 = vpop.f32.mrf.mxu0  ;;  %v661_v60 = vpop.f32.mrf.mxu1 }
 0x104   :  { %v1147_v58 = vmul.f32 0.1, %v1019_v50  ;;  %vm1054_vm4 = vcmp.ge.f32.partialorder %v990_v55, 0.0  ;;  %v1118_v61 = vmul.f32 0.1, %v990_v55  ;;  %vm1086_vm5 = vcmp.ge.f32.partialorder %v1022_v56, 0.0 }
 0x105   :  { %v1150_v62 = vmul.f32 0.1, %v1022_v56  ;;  %v1179_v63 = vsel %vm1051_vm2, %v987_v49, %v1115_v57  ;;  %v988_v1 = vadd.f32 %v1651_v40, %v533_v59  ;;  %v1020_v2 = vadd.f32 %v1651_v40, %v661_v60  ;;  %v1428_v3 = vpop.f32.mrf.mxu0  ;;  %v1460_v4 = vpop.f32.mrf.mxu1 }
 0x106   :  { %v1211_v0 = vsel %vm1083_vm3, %v1019_v50, %v1147_v58  ;;  %1243 = vst [vmem:[#allocation8] sm:$0xff] %v1179_v63  ;;  %v1182_v5 = vsel %vm1054_vm4, %v990_v55, %v1118_v61  ;;  %v993_v7 = vadd.f32 %v1428_v3, %v1651_v40  ;;  %v1025_v8 = vadd.f32 %v1460_v4, %v1651_v40 }
 0x107   :  { %1275 = vst [vmem:[#allocation8 + $0x100] sm:$0xff] %v1211_v0  ;;  %v1214_v6 = vsel %vm1086_vm5, %v1022_v56, %v1150_v62  ;;  %1246 = vst [vmem:[#allocation8 + $0x18] sm:$0xff] %v1182_v5  ;;  %vm1052_vm6 = vcmp.ge.f32.partialorder %v988_v1, 0.0  ;;  %v1116_v9 = vmul.f32 0.1, %v988_v1  ;;  %vm1084_vm7 = vcmp.ge.f32.partialorder %v1020_v2, 0.0  ;;  %v546_v11 = vpop.f32.mrf.mxu0  ;;  %v674_v12 = vpop.f32.mrf.mxu1 }
 0x108   :  { %1278 = vst [vmem:[#allocation8 + $0x118] sm:$0xff] %v1214_v6  ;;  %v1148_v10 = vmul.f32 0.1, %v1020_v2  ;;  %vm1057_vm8 = vcmp.ge.f32.partialorder %v993_v7, 0.0  ;;  %v1121_v13 = vmul.f32 0.1, %v993_v7  ;;  %v991_v17 = vadd.f32 %v1651_v40, %v546_v11 }
 0x109   :  { %vm1089_vm9 = vcmp.ge.f32.partialorder %v1025_v8, 0.0  ;;  %v1153_v14 = vmul.f32 0.1, %v1025_v8  ;;  %v1180_v15 = vsel %vm1052_vm6, %v988_v1, %v1116_v9  ;;  %v1023_v18 = vadd.f32 %v1651_v40, %v674_v12  ;;  %v1429_v19 = vpop.f32.mrf.mxu0  ;;  %v1461_v20 = vpop.f32.mrf.mxu1 }
 0x10a   :  { %v1212_v16 = vsel %vm1084_vm7, %v1020_v2, %v1148_v10  ;;  %1244 = vst [vmem:[#allocation8 + $0x8] sm:$0xff] %v1180_v15  ;;  %v1185_v21 = vsel %vm1057_vm8, %v993_v7, %v1121_v13  ;;  %v994_v23 = vadd.f32 %v1429_v19, %v1651_v40  ;;  %v1026_v24 = vadd.f32 %v1461_v20, %v1651_v40 }
 0x10b   :  { %1276 = vst [vmem:[#allocation8 + $0x108] sm:$0xff] %v1212_v16  ;;  %v1217_v22 = vsel %vm1089_vm9, %v1025_v8, %v1153_v14  ;;  %1249 = vst [vmem:[#allocation8 + $0x30] sm:$0xff] %v1185_v21  ;;  %vm1055_vm10 = vcmp.ge.f32.partialorder %v991_v17, 0.0  ;;  %v1119_v25 = vmul.f32 0.1, %v991_v17  ;;  %vm1087_vm11 = vcmp.ge.f32.partialorder %v1023_v18, 0.0  ;;  %v549_v27 = vpop.f32.mrf.mxu0  ;;  %v677_v28 = vpop.f32.mrf.mxu1 }
 0x10c   :  { %1281 = vst [vmem:[#allocation8 + $0x130] sm:$0xff] %v1217_v22  ;;  %v1151_v26 = vmul.f32 0.1, %v1023_v18  ;;  %vm1058_vm12 = vcmp.ge.f32.partialorder %v994_v23, 0.0  ;;  %v1122_v29 = vmul.f32 0.1, %v994_v23  ;;  %v992_v33 = vadd.f32 %v1651_v40, %v549_v27 }
 0x10d   :  { %vm1090_vm13 = vcmp.ge.f32.partialorder %v1026_v24, 0.0  ;;  %v1154_v30 = vmul.f32 0.1, %v1026_v24  ;;  %v1183_v31 = vsel %vm1055_vm10, %v991_v17, %v1119_v25  ;;  %v1024_v34 = vadd.f32 %v1651_v40, %v677_v28  ;;  %v1432_v35 = vpop.f32.mrf.mxu0  ;;  %v1464_v36 = vpop.f32.mrf.mxu1 }
 0x10e   :  { %v1215_v32 = vsel %vm1087_vm11, %v1023_v18, %v1151_v26  ;;  %1247 = vst [vmem:[#allocation8 + $0x20] sm:$0xff] %v1183_v31  ;;  %v1186_v37 = vsel %vm1058_vm12, %v994_v23, %v1122_v29  ;;  %v997_v39 = vadd.f32 %v1432_v35, %v1651_v40  ;;  %v1029_v41 = vadd.f32 %v1464_v36, %v1651_v40 }
 0x10f   :  { %1279 = vst [vmem:[#allocation8 + $0x120] sm:$0xff] %v1215_v32  ;;  %v1218_v38 = vsel %vm1090_vm13, %v1026_v24, %v1154_v30  ;;  %1250 = vst [vmem:[#allocation8 + $0x38] sm:$0xff] %v1186_v37  ;;  %vm1056_vm14 = vcmp.ge.f32.partialorder %v992_v33, 0.0  ;;  %v1120_v42 = vmul.f32 0.1, %v992_v33  ;;  %vm1088_vm15 = vcmp.ge.f32.partialorder %v1024_v34, 0.0  ;;  %v562_v44 = vpop.f32.mrf.mxu0  ;;  %v690_v45 = vpop.f32.mrf.mxu1 }
 0x110   :  { %1282 = vst [vmem:[#allocation8 + $0x138] sm:$0xff] %v1218_v38  ;;  %v1152_v43 = vmul.f32 0.1, %v1024_v34  ;;  %vm1061_vm0 = vcmp.ge.f32.partialorder %v997_v39, 0.0  ;;  %v1125_v46 = vmul.f32 0.1, %v997_v39  ;;  %v995_v50 = vadd.f32 %v1651_v40, %v562_v44 }
 0x111   :  { %vm1093_vm1 = vcmp.ge.f32.partialorder %v1029_v41, 0.0  ;;  %v1157_v47 = vmul.f32 0.1, %v1029_v41  ;;  %v1184_v48 = vsel %vm1056_vm14, %v992_v33, %v1120_v42  ;;  %v1027_v51 = vadd.f32 %v1651_v40, %v690_v45  ;;  %v1433_v52 = vpop.f32.mrf.mxu0  ;;  %v1465_v53 = vpop.f32.mrf.mxu1 }
 0x112   :  { %v1216_v49 = vsel %vm1088_vm15, %v1024_v34, %v1152_v43  ;;  %1248 = vst [vmem:[#allocation8 + $0x28] sm:$0xff] %v1184_v48  ;;  %v1189_v54 = vsel %vm1061_vm0, %v997_v39, %v1125_v46  ;;  %v998_v56 = vadd.f32 %v1433_v52, %v1651_v40  ;;  %v1030_v57 = vadd.f32 %v1465_v53, %v1651_v40 }
 0x113   :  { %1280 = vst [vmem:[#allocation8 + $0x128] sm:$0xff] %v1216_v49  ;;  %v1221_v55 = vsel %vm1093_vm1, %v1029_v41, %v1157_v47  ;;  %1253 = vst [vmem:[#allocation8 + $0x50] sm:$0xff] %v1189_v54  ;;  %vm1059_vm2 = vcmp.ge.f32.partialorder %v995_v50, 0.0  ;;  %v1123_v58 = vmul.f32 0.1, %v995_v50  ;;  %vm1091_vm3 = vcmp.ge.f32.partialorder %v1027_v51, 0.0  ;;  %v565_v60 = vpop.f32.mrf.mxu0  ;;  %v693_v61 = vpop.f32.mrf.mxu1 }
 0x114   :  { %1285 = vst [vmem:[#allocation8 + $0x150] sm:$0xff] %v1221_v55  ;;  %v1155_v59 = vmul.f32 0.1, %v1027_v51  ;;  %vm1062_vm4 = vcmp.ge.f32.partialorder %v998_v56, 0.0  ;;  %v1126_v62 = vmul.f32 0.1, %v998_v56  ;;  %v996_v2 = vadd.f32 %v1651_v40, %v565_v60 }
 0x115   :  { %vm1094_vm5 = vcmp.ge.f32.partialorder %v1030_v57, 0.0  ;;  %v1158_v63 = vmul.f32 0.1, %v1030_v57  ;;  %v1187_v0 = vsel %vm1059_vm2, %v995_v50, %v1123_v58  ;;  %v1028_v3 = vadd.f32 %v1651_v40, %v693_v61  ;;  %v1436_v4 = vpop.f32.mrf.mxu0  ;;  %v1468_v5 = vpop.f32.mrf.mxu1 }
 0x116   :  { %v1219_v1 = vsel %vm1091_vm3, %v1027_v51, %v1155_v59  ;;  %1251 = vst [vmem:[#allocation8 + $0x40] sm:$0xff] %v1187_v0  ;;  %v1190_v6 = vsel %vm1062_vm4, %v998_v56, %v1126_v62  ;;  %v1001_v8 = vadd.f32 %v1436_v4, %v1651_v40  ;;  %v1033_v9 = vadd.f32 %v1468_v5, %v1651_v40 }
 0x117   :  { %1283 = vst [vmem:[#allocation8 + $0x140] sm:$0xff] %v1219_v1  ;;  %v1222_v7 = vsel %vm1094_vm5, %v1030_v57, %v1158_v63  ;;  %1254 = vst [vmem:[#allocation8 + $0x58] sm:$0xff] %v1190_v6  ;;  %vm1060_vm6 = vcmp.ge.f32.partialorder %v996_v2, 0.0  ;;  %v1124_v10 = vmul.f32 0.1, %v996_v2  ;;  %vm1092_vm7 = vcmp.ge.f32.partialorder %v1028_v3, 0.0  ;;  %v578_v12 = vpop.f32.mrf.mxu0  ;;  %v706_v13 = vpop.f32.mrf.mxu1 }
 0x118   :  { %1286 = vst [vmem:[#allocation8 + $0x158] sm:$0xff] %v1222_v7  ;;  %v1156_v11 = vmul.f32 0.1, %v1028_v3  ;;  %vm1065_vm8 = vcmp.ge.f32.partialorder %v1001_v8, 0.0  ;;  %v1129_v14 = vmul.f32 0.1, %v1001_v8  ;;  %v999_v18 = vadd.f32 %v1651_v40, %v578_v12 }
 0x119   :  { %vm1097_vm9 = vcmp.ge.f32.partialorder %v1033_v9, 0.0  ;;  %v1161_v15 = vmul.f32 0.1, %v1033_v9  ;;  %v1188_v16 = vsel %vm1060_vm6, %v996_v2, %v1124_v10  ;;  %v1031_v19 = vadd.f32 %v1651_v40, %v706_v13  ;;  %v1437_v20 = vpop.f32.mrf.mxu0  ;;  %v1469_v21 = vpop.f32.mrf.mxu1 }
 0x11a   :  { %v1220_v17 = vsel %vm1092_vm7, %v1028_v3, %v1156_v11  ;;  %1252 = vst [vmem:[#allocation8 + $0x48] sm:$0xff] %v1188_v16  ;;  %v1193_v22 = vsel %vm1065_vm8, %v1001_v8, %v1129_v14  ;;  %v1002_v24 = vadd.f32 %v1437_v20, %v1651_v40  ;;  %v1034_v25 = vadd.f32 %v1469_v21, %v1651_v40 }
 0x11b   :  { %1284 = vst [vmem:[#allocation8 + $0x148] sm:$0xff] %v1220_v17  ;;  %v1225_v23 = vsel %vm1097_vm9, %v1033_v9, %v1161_v15  ;;  %1257 = vst [vmem:[#allocation8 + $0x70] sm:$0xff] %v1193_v22  ;;  %vm1063_vm10 = vcmp.ge.f32.partialorder %v999_v18, 0.0  ;;  %v1127_v26 = vmul.f32 0.1, %v999_v18  ;;  %vm1095_vm11 = vcmp.ge.f32.partialorder %v1031_v19, 0.0  ;;  %v581_v28 = vpop.f32.mrf.mxu0  ;;  %v709_v29 = vpop.f32.mrf.mxu1 }
 0x11c   :  { %1289 = vst [vmem:[#allocation8 + $0x170] sm:$0xff] %v1225_v23  ;;  %v1159_v27 = vmul.f32 0.1, %v1031_v19  ;;  %vm1066_vm12 = vcmp.ge.f32.partialorder %v1002_v24, 0.0  ;;  %v1130_v30 = vmul.f32 0.1, %v1002_v24  ;;  %v1000_v34 = vadd.f32 %v1651_v40, %v581_v28 }
 0x11d   :  { %vm1098_vm13 = vcmp.ge.f32.partialorder %v1034_v25, 0.0  ;;  %v1162_v31 = vmul.f32 0.1, %v1034_v25  ;;  %v1191_v32 = vsel %vm1063_vm10, %v999_v18, %v1127_v26  ;;  %v1032_v35 = vadd.f32 %v1651_v40, %v709_v29  ;;  %v1440_v36 = vpop.f32.mrf.mxu0  ;;  %v1472_v37 = vpop.f32.mrf.mxu1 }
 0x11e   :  { %v1223_v33 = vsel %vm1095_vm11, %v1031_v19, %v1159_v27  ;;  %1255 = vst [vmem:[#allocation8 + $0x60] sm:$0xff] %v1191_v32  ;;  %v1194_v38 = vsel %vm1066_vm12, %v1002_v24, %v1130_v30  ;;  %v1005_v41 = vadd.f32 %v1440_v36, %v1651_v40  ;;  %v1037_v42 = vadd.f32 %v1472_v37, %v1651_v40 }
 0x11f   :  { %1287 = vst [vmem:[#allocation8 + $0x160] sm:$0xff] %v1223_v33  ;;  %v1226_v39 = vsel %vm1098_vm13, %v1034_v25, %v1162_v31  ;;  %1258 = vst [vmem:[#allocation8 + $0x78] sm:$0xff] %v1194_v38  ;;  %vm1064_vm14 = vcmp.ge.f32.partialorder %v1000_v34, 0.0  ;;  %v1128_v43 = vmul.f32 0.1, %v1000_v34  ;;  %vm1096_vm15 = vcmp.ge.f32.partialorder %v1032_v35, 0.0  ;;  %v594_v45 = vpop.f32.mrf.mxu0  ;;  %v722_v46 = vpop.f32.mrf.mxu1 }
 0x120   :  { %1290 = vst [vmem:[#allocation8 + $0x178] sm:$0xff] %v1226_v39  ;;  %v1160_v44 = vmul.f32 0.1, %v1032_v35  ;;  %vm1069_vm0 = vcmp.ge.f32.partialorder %v1005_v41, 0.0  ;;  %v1133_v47 = vmul.f32 0.1, %v1005_v41  ;;  %v1003_v51 = vadd.f32 %v1651_v40, %v594_v45 }
 0x121   :  { %vm1101_vm1 = vcmp.ge.f32.partialorder %v1037_v42, 0.0  ;;  %v1165_v48 = vmul.f32 0.1, %v1037_v42  ;;  %v1192_v49 = vsel %vm1064_vm14, %v1000_v34, %v1128_v43  ;;  %v1035_v52 = vadd.f32 %v1651_v40, %v722_v46  ;;  %v1441_v53 = vpop.f32.mrf.mxu0  ;;  %v1473_v54 = vpop.f32.mrf.mxu1 }
 0x122   :  { %v1224_v50 = vsel %vm1096_vm15, %v1032_v35, %v1160_v44  ;;  %1256 = vst [vmem:[#allocation8 + $0x68] sm:$0xff] %v1192_v49  ;;  %v1197_v55 = vsel %vm1069_vm0, %v1005_v41, %v1133_v47  ;;  %v1006_v57 = vadd.f32 %v1441_v53, %v1651_v40  ;;  %v1038_v58 = vadd.f32 %v1473_v54, %v1651_v40 }
 0x123   :  { %1288 = vst [vmem:[#allocation8 + $0x168] sm:$0xff] %v1224_v50  ;;  %v1229_v56 = vsel %vm1101_vm1, %v1037_v42, %v1165_v48  ;;  %1261 = vst [vmem:[#allocation8 + $0x90] sm:$0xff] %v1197_v55  ;;  %vm1067_vm2 = vcmp.ge.f32.partialorder %v1003_v51, 0.0  ;;  %v1131_v59 = vmul.f32 0.1, %v1003_v51  ;;  %vm1099_vm3 = vcmp.ge.f32.partialorder %v1035_v52, 0.0  ;;  %v597_v61 = vpop.f32.mrf.mxu0  ;;  %v725_v62 = vpop.f32.mrf.mxu1 }
 0x124   :  { %1293 = vst [vmem:[#allocation8 + $0x190] sm:$0xff] %v1229_v56  ;;  %v1163_v60 = vmul.f32 0.1, %v1035_v52  ;;  %vm1070_vm4 = vcmp.ge.f32.partialorder %v1006_v57, 0.0  ;;  %v1134_v63 = vmul.f32 0.1, %v1006_v57  ;;  %v1004_v3 = vadd.f32 %v1651_v40, %v597_v61 }
 0x125   :  { %vm1102_vm5 = vcmp.ge.f32.partialorder %v1038_v58, 0.0  ;;  %v1166_v0 = vmul.f32 0.1, %v1038_v58  ;;  %v1195_v1 = vsel %vm1067_vm2, %v1003_v51, %v1131_v59  ;;  %v1036_v4 = vadd.f32 %v1651_v40, %v725_v62  ;;  %v1444_v5 = vpop.f32.mrf.mxu0  ;;  %v1476_v6 = vpop.f32.mrf.mxu1 }
 0x126   :  { %v1227_v2 = vsel %vm1099_vm3, %v1035_v52, %v1163_v60  ;;  %1259 = vst [vmem:[#allocation8 + $0x80] sm:$0xff] %v1195_v1  ;;  %v1198_v7 = vsel %vm1070_vm4, %v1006_v57, %v1134_v63  ;;  %v1009_v9 = vadd.f32 %v1444_v5, %v1651_v40  ;;  %v1041_v10 = vadd.f32 %v1476_v6, %v1651_v40 }
 0x127   :  { %1291 = vst [vmem:[#allocation8 + $0x180] sm:$0xff] %v1227_v2  ;;  %v1230_v8 = vsel %vm1102_vm5, %v1038_v58, %v1166_v0  ;;  %1262 = vst [vmem:[#allocation8 + $0x98] sm:$0xff] %v1198_v7  ;;  %vm1068_vm6 = vcmp.ge.f32.partialorder %v1004_v3, 0.0  ;;  %v1132_v11 = vmul.f32 0.1, %v1004_v3  ;;  %vm1100_vm7 = vcmp.ge.f32.partialorder %v1036_v4, 0.0  ;;  %v610_v13 = vpop.f32.mrf.mxu0  ;;  %v738_v14 = vpop.f32.mrf.mxu1 }
 0x128   :  { %1294 = vst [vmem:[#allocation8 + $0x198] sm:$0xff] %v1230_v8  ;;  %v1164_v12 = vmul.f32 0.1, %v1036_v4  ;;  %vm1073_vm8 = vcmp.ge.f32.partialorder %v1009_v9, 0.0  ;;  %v1137_v15 = vmul.f32 0.1, %v1009_v9  ;;  %v1007_v19 = vadd.f32 %v1651_v40, %v610_v13 }
 0x129   :  { %vm1105_vm9 = vcmp.ge.f32.partialorder %v1041_v10, 0.0  ;;  %v1169_v16 = vmul.f32 0.1, %v1041_v10  ;;  %v1196_v17 = vsel %vm1068_vm6, %v1004_v3, %v1132_v11  ;;  %v1039_v20 = vadd.f32 %v1651_v40, %v738_v14  ;;  %v1445_v21 = vpop.f32.mrf.mxu0  ;;  %v1477_v22 = vpop.f32.mrf.mxu1 }
 0x12a   :  { %v1228_v18 = vsel %vm1100_vm7, %v1036_v4, %v1164_v12  ;;  %1260 = vst [vmem:[#allocation8 + $0x88] sm:$0xff] %v1196_v17  ;;  %v1201_v23 = vsel %vm1073_vm8, %v1009_v9, %v1137_v15  ;;  %v1010_v25 = vadd.f32 %v1445_v21, %v1651_v40  ;;  %v1042_v26 = vadd.f32 %v1477_v22, %v1651_v40 }
 0x12b   :  { %1292 = vst [vmem:[#allocation8 + $0x188] sm:$0xff] %v1228_v18  ;;  %v1233_v24 = vsel %vm1105_vm9, %v1041_v10, %v1169_v16  ;;  %1265 = vst [vmem:[#allocation8 + $0xb0] sm:$0xff] %v1201_v23  ;;  %vm1071_vm10 = vcmp.ge.f32.partialorder %v1007_v19, 0.0  ;;  %v1135_v27 = vmul.f32 0.1, %v1007_v19  ;;  %vm1103_vm11 = vcmp.ge.f32.partialorder %v1039_v20, 0.0  ;;  %v613_v29 = vpop.f32.mrf.mxu0  ;;  %v741_v30 = vpop.f32.mrf.mxu1 }
 0x12c   :  { %1297 = vst [vmem:[#allocation8 + $0x1b0] sm:$0xff] %v1233_v24  ;;  %v1167_v28 = vmul.f32 0.1, %v1039_v20  ;;  %vm1074_vm12 = vcmp.ge.f32.partialorder %v1010_v25, 0.0  ;;  %v1138_v31 = vmul.f32 0.1, %v1010_v25  ;;  %v1008_v35 = vadd.f32 %v1651_v40, %v613_v29 }
 0x12d   :  { %vm1106_vm13 = vcmp.ge.f32.partialorder %v1042_v26, 0.0  ;;  %v1170_v32 = vmul.f32 0.1, %v1042_v26  ;;  %v1199_v33 = vsel %vm1071_vm10, %v1007_v19, %v1135_v27  ;;  %v1040_v36 = vadd.f32 %v1651_v40, %v741_v30  ;;  %v1448_v37 = vpop.f32.mrf.mxu0  ;;  %v1480_v38 = vpop.f32.mrf.mxu1 }
 0x12e   :  { %v1231_v34 = vsel %vm1103_vm11, %v1039_v20, %v1167_v28  ;;  %1263 = vst [vmem:[#allocation8 + $0xa0] sm:$0xff] %v1199_v33  ;;  %v1202_v39 = vsel %vm1074_vm12, %v1010_v25, %v1138_v31  ;;  %v1013_v42 = vadd.f32 %v1448_v37, %v1651_v40  ;;  %v1045_v43 = vadd.f32 %v1480_v38, %v1651_v40 }
 0x12f   :  { %1295 = vst [vmem:[#allocation8 + $0x1a0] sm:$0xff] %v1231_v34  ;;  %v1234_v41 = vsel %vm1106_vm13, %v1042_v26, %v1170_v32  ;;  %1266 = vst [vmem:[#allocation8 + $0xb8] sm:$0xff] %v1202_v39  ;;  %vm1072_vm14 = vcmp.ge.f32.partialorder %v1008_v35, 0.0  ;;  %v1136_v44 = vmul.f32 0.1, %v1008_v35  ;;  %vm1104_vm15 = vcmp.ge.f32.partialorder %v1040_v36, 0.0  ;;  %v626_v46 = vpop.f32.mrf.mxu0  ;;  %v754_v47 = vpop.f32.mrf.mxu1 }
 0x130   :  { %1298 = vst [vmem:[#allocation8 + $0x1b8] sm:$0xff] %v1234_v41  ;;  %v1168_v45 = vmul.f32 0.1, %v1040_v36  ;;  %vm1077_vm0 = vcmp.ge.f32.partialorder %v1013_v42, 0.0  ;;  %v1141_v48 = vmul.f32 0.1, %v1013_v42  ;;  %v1011_v52 = vadd.f32 %v1651_v40, %v626_v46 }
 0x131   :  { %vm1109_vm1 = vcmp.ge.f32.partialorder %v1045_v43, 0.0  ;;  %v1173_v49 = vmul.f32 0.1, %v1045_v43  ;;  %v1200_v50 = vsel %vm1072_vm14, %v1008_v35, %v1136_v44  ;;  %v1043_v53 = vadd.f32 %v1651_v40, %v754_v47  ;;  %v1449_v54 = vpop.f32.mrf.mxu0  ;;  %v1481_v55 = vpop.f32.mrf.mxu1 }
 0x132   :  { %v1232_v51 = vsel %vm1104_vm15, %v1040_v36, %v1168_v45  ;;  %1264 = vst [vmem:[#allocation8 + $0xa8] sm:$0xff] %v1200_v50  ;;  %v1205_v56 = vsel %vm1077_vm0, %v1013_v42, %v1141_v48  ;;  %v1014_v58 = vadd.f32 %v1449_v54, %v1651_v40  ;;  %v1046_v59 = vadd.f32 %v1481_v55, %v1651_v40 }
 0x133   :  { %1296 = vst [vmem:[#allocation8 + $0x1a8] sm:$0xff] %v1232_v51  ;;  %v1237_v57 = vsel %vm1109_vm1, %v1045_v43, %v1173_v49  ;;  %1269 = vst [vmem:[#allocation8 + $0xd0] sm:$0xff] %v1205_v56  ;;  %vm1075_vm2 = vcmp.ge.f32.partialorder %v1011_v52, 0.0  ;;  %v1139_v60 = vmul.f32 0.1, %v1011_v52  ;;  %vm1107_vm3 = vcmp.ge.f32.partialorder %v1043_v53, 0.0  ;;  %v629_v62 = vpop.f32.mrf.mxu0  ;;  %v757_v63 = vpop.f32.mrf.mxu1 }
 0x134   :  { %1301 = vst [vmem:[#allocation8 + $0x1d0] sm:$0xff] %v1237_v57  ;;  %v1171_v61 = vmul.f32 0.1, %v1043_v53  ;;  %vm1078_vm4 = vcmp.ge.f32.partialorder %v1014_v58, 0.0  ;;  %v1142_v0 = vmul.f32 0.1, %v1014_v58  ;;  %v1012_v4 = vadd.f32 %v1651_v40, %v629_v62 }
 0x135   :  { %vm1110_vm5 = vcmp.ge.f32.partialorder %v1046_v59, 0.0  ;;  %v1174_v1 = vmul.f32 0.1, %v1046_v59  ;;  %v1203_v2 = vsel %vm1075_vm2, %v1011_v52, %v1139_v60  ;;  %v1044_v5 = vadd.f32 %v1651_v40, %v757_v63  ;;  %v1452_v6 = vpop.f32.mrf.mxu0  ;;  %v1484_v7 = vpop.f32.mrf.mxu1 }
 0x136   :  { %v1235_v3 = vsel %vm1107_vm3, %v1043_v53, %v1171_v61  ;;  %1267 = vst [vmem:[#allocation8 + $0xc0] sm:$0xff] %v1203_v2  ;;  %v1206_v8 = vsel %vm1078_vm4, %v1014_v58, %v1142_v0  ;;  %v1017_v10 = vadd.f32 %v1452_v6, %v1651_v40  ;;  %v1049_v11 = vadd.f32 %v1484_v7, %v1651_v40 }
 0x137   :  { %1299 = vst [vmem:[#allocation8 + $0x1c0] sm:$0xff] %v1235_v3  ;;  %v1238_v9 = vsel %vm1110_vm5, %v1046_v59, %v1174_v1  ;;  %1270 = vst [vmem:[#allocation8 + $0xd8] sm:$0xff] %v1206_v8  ;;  %vm1076_vm6 = vcmp.ge.f32.partialorder %v1012_v4, 0.0  ;;  %v1140_v12 = vmul.f32 0.1, %v1012_v4  ;;  %vm1108_vm7 = vcmp.ge.f32.partialorder %v1044_v5, 0.0  ;;  %v642_v14 = vpop.f32.mrf.mxu0  ;;  %v770_v15 = vpop.f32.mrf.mxu1 }
 0x138   :  { %1302 = vst [vmem:[#allocation8 + $0x1d8] sm:$0xff] %v1238_v9  ;;  %v1172_v13 = vmul.f32 0.1, %v1044_v5  ;;  %vm1081_vm8 = vcmp.ge.f32.partialorder %v1017_v10, 0.0  ;;  %v1145_v16 = vmul.f32 0.1, %v1017_v10  ;;  %v1015_v20 = vadd.f32 %v1651_v40, %v642_v14 }
 0x139   :  { %vm1113_vm9 = vcmp.ge.f32.partialorder %v1049_v11, 0.0  ;;  %v1177_v17 = vmul.f32 0.1, %v1049_v11  ;;  %v1204_v18 = vsel %vm1076_vm6, %v1012_v4, %v1140_v12  ;;  %v1047_v21 = vadd.f32 %v1651_v40, %v770_v15  ;;  %v1453_v22 = vpop.f32.mrf.mxu0  ;;  %v1485_v23 = vpop.f32.mrf.mxu1 }
 0x13a   :  { %v1236_v19 = vsel %vm1108_vm7, %v1044_v5, %v1172_v13  ;;  %1268 = vst [vmem:[#allocation8 + $0xc8] sm:$0xff] %v1204_v18  ;;  %v1209_v24 = vsel %vm1081_vm8, %v1017_v10, %v1145_v16  ;;  %v1018_v26 = vadd.f32 %v1453_v22, %v1651_v40  ;;  %v1050_v27 = vadd.f32 %v1485_v23, %v1651_v40 }
 0x13b   :  { %1300 = vst [vmem:[#allocation8 + $0x1c8] sm:$0xff] %v1236_v19  ;;  %v1241_v25 = vsel %vm1113_vm9, %v1049_v11, %v1177_v17  ;;  %1273 = vst [vmem:[#allocation8 + $0xf0] sm:$0xff] %v1209_v24  ;;  %vm1079_vm10 = vcmp.ge.f32.partialorder %v1015_v20, 0.0  ;;  %v1143_v28 = vmul.f32 0.1, %v1015_v20  ;;  %vm1111_vm11 = vcmp.ge.f32.partialorder %v1047_v21, 0.0  ;;  %v645_v30 = vpop.f32.mrf.mxu0  ;;  %v773_v31 = vpop.f32.mrf.mxu1 }
 0x13c   :  { %1305 = vst [vmem:[#allocation8 + $0x1f0] sm:$0xff] %v1241_v25  ;;  %v1175_v29 = vmul.f32 0.1, %v1047_v21  ;;  %vm1082_vm12 = vcmp.ge.f32.partialorder %v1018_v26, 0.0  ;;  %v1146_v32 = vmul.f32 0.1, %v1018_v26  ;;  %v1016_v36 = vadd.f32 %v1651_v40, %v645_v30 }
 0x13d   :  { %vm1114_vm13 = vcmp.ge.f32.partialorder %v1050_v27, 0.0  ;;  %v1178_v33 = vmul.f32 0.1, %v1050_v27  ;;  %v1207_v34 = vsel %vm1079_vm10, %v1015_v20, %v1143_v28  ;;  %v1048_v37 = vadd.f32 %v1651_v40, %v773_v31 }
 0x13e   :  { %v1239_v35 = vsel %vm1111_vm11, %v1047_v21, %v1175_v29  ;;  %1271 = vst [vmem:[#allocation8 + $0xe0] sm:$0xff] %v1207_v34  ;;  %v1210_v38 = vsel %vm1082_vm12, %v1018_v26, %v1146_v32  ;;  %vm1080_vm14 = vcmp.ge.f32.partialorder %v1016_v36, 0.0  ;;  %v1144_v41 = vmul.f32 0.1, %v1016_v36 }
 0x13f   :  { %1303 = vst [vmem:[#allocation8 + $0x1e0] sm:$0xff] %v1239_v35  ;;  %v1242_v39 = vsel %vm1114_vm13, %v1050_v27, %v1178_v33  ;;  %1274 = vst [vmem:[#allocation8 + $0xf8] sm:$0xff] %v1210_v38  ;;  %vm1112_vm15 = vcmp.ge.f32.partialorder %v1048_v37, 0.0  ;;  %v1176_v42 = vmul.f32 0.1, %v1048_v37 }
 0x140   :  { %1306 = vst [vmem:[#allocation8 + $0x1f8] sm:$0xff] %v1242_v39  ;;  %v1208_v43 = vsel %vm1080_vm14, %v1016_v36, %v1144_v41 }
 0x141   :  { %v1240_v44 = vsel %vm1112_vm15, %v1048_v37, %v1176_v42  ;;  %1272 = vst [vmem:[#allocation8 + $0xe8] sm:$0xff] %v1208_v43 }
 0x142   :  { %1304 = vst [vmem:[#allocation8 + $0x1e8] sm:$0xff] %v1240_v44 }
 0x143   :  { %1600 = shalt.err (!%p1597_p0)
}
 0x144   :  { %s1620_s26 = smov 128   ;;  %s1621_s27 = smov 8  }
 0x145   :  { %1318 = dma.vmem_to_hbm [thread:$0]  %s1313_s24, 8192, %s1723_s3, [#allocation5], %s1620_s26, %s1620_s26, %s1621_s27  }
 0x146   :  { %1613 = dma.done.wait [#allocation5], 8192  }
 0x147   :  { %1614 = vsyncadd [#allocation5], 4294959104 }
 0x148   :  { %1322 = vsyncpa [#allocation4], 1 }
 0x149   :  { %1323 = vsyncpa [#allocation7], 1 }
 0x14a   :  { %1324 = vsyncpa [#allocation5], 1 }

</bundles_post_ra>
